<compile_context>
chip_gen: v5e
topology: v5e:2x2
jax: 0.10.0
libtpu: 0.0.40
codegen_flags: <defaults>
</compile_context>

<pallas_src>
import jax
import jax.numpy as jnp
from jax.experimental import pallas as pl
from jax.experimental.pallas import tpu as pltpu


def _mf_kernel(uid_ref, mid_ref, utab_ref, mtab_ref, out_ref):
    """One grid step = one block of TB batch elements.

    uid_ref / mid_ref : (1, TB)  int32 ids for this block (VMEM).
    utab_ref          : (D, NU)  user table, pre-transposed, VMEM resident.
    mtab_ref          : (D, NM)  movie table, pre-transposed, VMEM resident.
    out_ref           : (1, TB)  lane-dense row of per-element dot products.
    """
    uids = uid_ref[0, :]                       # (TB,) int32, lane vector
    mids = mid_ref[0, :]

    nu = utab_ref.shape[1]
    nm = mtab_ref.shape[1]
    tb = uids.shape[0]

    # One-hot gather masks: table rows on sublanes, batch on lanes. Built
    # directly in the matmul input dtype; iota shared when table sizes match.
    if nu == nm:
        iota_u = iota_m = jax.lax.broadcasted_iota(jnp.int32, (nu, tb), 0)
    else:
        iota_u = jax.lax.broadcasted_iota(jnp.int32, (nu, tb), 0)
        iota_m = jax.lax.broadcasted_iota(jnp.int32, (nm, tb), 0)
    u_oh = (iota_u == uids[None, :]).astype(utab_ref.dtype)          # (NU, TB)
    m_oh = (iota_m == mids[None, :]).astype(mtab_ref.dtype)          # (NM, TB)

    # MXU gather: (D, NU) @ (NU, TB) -> (D, TB). Contraction is over the lane
    # dim of the grid-invariant table (no per-step relayout); result keeps the
    # batch lane-dense. HIGHEST precision keeps the gather f32-exact.
    dn = (((1,), (0,)), ((), ()))
    u_g = jax.lax.dot_general(utab_ref[...], u_oh, dn,
                              preferred_element_type=jnp.float32,
                              precision=jax.lax.Precision.HIGHEST)    # (D, TB)
    m_g = jax.lax.dot_general(mtab_ref[...], m_oh, dn,
                              preferred_element_type=jnp.float32,
                              precision=jax.lax.Precision.HIGHEST)    # (D, TB)

    # Elementwise product, sublane reduce over D -> (TB,) lane vector; store as
    # a full lane-dense row (unmasked vst).
    out_ref[0, :] = jnp.sum(u_g * m_g, axis=0)


def _padded_vmem_bytes(rows, cols, itemsize):
    """Conservative VMEM footprint of a (rows, cols) tile after (8,128) tiling."""
    return (-(-rows // 8) * 8) * (-(-cols // 128) * 128) * itemsize


def matrix_factorization_forward(user_emb, movie_emb, user, movie, *, tb_max=512):
    """user_emb: (num_users, D), movie_emb: (num_movies, D), user/movie: (B,)
    integer index vectors. Returns (B,) float32 dot products."""
    B = user.shape[0]
    nu, D = user_emb.shape
    nm, _ = movie_emb.shape

    # Batch tile: large enough to amortize per-grid-step overhead and fill the
    # 256-wide MXU on v6e/v7x, but a tiny batch only rounds up to the next 128.
    tb = min(tb_max, 128 * pl.cdiv(B, 128))
    nb = pl.cdiv(B, tb)
    b_pad = nb * tb

    # Pre-transpose tables to (D, N): lane-dense over N (no 4x lane padding at
    # D=32) and no per-step XLU transpose of the resident operand.
    utab_t = user_emb.T       # (D, NU)
    mtab_t = movie_emb.T      # (D, NM)

    # Crossover guard for the VMEM-resident one-hot-gather design: both tables
    # must fit the per-core budget of the smallest target (v7x: 64 MiB physical,
    # 32 MiB default scoped VMEM per TensorCore).
    itemsize = jnp.dtype(user_emb.dtype).itemsize
    table_bytes = (_padded_vmem_bytes(D, nu, itemsize)
                   + _padded_vmem_bytes(D, nm, itemsize))
    TABLE_BUDGET = 24 * 1024 * 1024
    if table_bytes > TABLE_BUDGET:
        # TODO(synk): large-table fallback (memory_space=pl.ANY tables + manual
        # double-buffered DMA row gather) is not implemented here.
        raise ValueError(
            f"embedding tables need ~{table_bytes} B of VMEM (padded), above the "
            f"{TABLE_BUDGET} B resident budget; use a DMA-gather kernel instead")

    # Pad ids up to nb*tb (padded slots use id 0; results discarded below).
    uid = jnp.zeros((b_pad,), jnp.int32).at[:B].set(user.astype(jnp.int32))
    mid = jnp.zeros((b_pad,), jnp.int32).at[:B].set(movie.astype(jnp.int32))
    uid = uid.reshape(nb, tb)
    mid = mid.reshape(nb, tb)

    # Grid-invariant table blocks gain nothing from double-buffering; single-
    # buffer them once they are big enough for the extra copy to matter (v7x).
    table_mode = pl.Buffered(1) if table_bytes > (1 << 20) else None

    grid_spec = pltpu.PrefetchScalarGridSpec(
        num_scalar_prefetch=0,
        grid=(nb,),
        in_specs=[
            # Per-block id rows (lane-dense, tb is a multiple of 128).
            pl.BlockSpec((1, tb), lambda i: (i, 0)),
            pl.BlockSpec((1, tb), lambda i: (i, 0)),
            # Full transposed tables, VMEM resident (constant block index).
            pl.BlockSpec((D, nu), lambda i: (0, 0), pipeline_mode=table_mode),
            pl.BlockSpec((D, nm), lambda i: (0, 0), pipeline_mode=table_mode),
        ],
        out_specs=pl.BlockSpec((1, tb), lambda i: (i, 0)),
    )

    # VMEM limit sized to actual need: resident tables + double-buffered id/out
    # tiles + one-hot / gathered intermediates, with headroom, capped at 48 MiB
    # (well under v7x's 64 MiB physical VMEM per TensorCore).
    tile_bytes = 3 * 2 * _padded_vmem_bytes(1, tb, 4)
    interm_bytes = (_padded_vmem_bytes(nu, tb, 4) + _padded_vmem_bytes(nm, tb, 4)
                    + 2 * _padded_vmem_bytes(D, tb, 4))
    vmem_limit = min(48 * 1024 * 1024,
                     max(16 * 1024 * 1024,
                         table_bytes + tile_bytes + interm_bytes + 4 * 1024 * 1024))

    out = pl.pallas_call(
        _mf_kernel,
        grid_spec=grid_spec,
        out_shape=jax.ShapeDtypeStruct((nb, tb), jnp.float32),
        compiler_params=pltpu.CompilerParams(
            # Batch blocks are independent -> v7x megacore can split them
            # (no-op on single-TC v5e/v6e).
            dimension_semantics=("parallel",),
            vmem_limit_bytes=int(vmem_limit),
        ),
    )(uid, mid, utab_t, mtab_t)

    return out.reshape(b_pad)[:B]


if __name__ == "__main__":
    num_users, num_movies, embedding_dim = 64, 128, 32
    batch = 8

    key = jax.random.PRNGKey(0)
    k_u, k_m, k_ui, k_mi = jax.random.split(key, 4)

    # nn.Embedding default init: N(0, 1)
    user_emb = jax.random.normal(k_u, (num_users, embedding_dim), dtype=jnp.float32)
    movie_emb = jax.random.normal(k_m, (num_movies, embedding_dim), dtype=jnp.float32)

    user = jax.random.randint(k_ui, (batch,), 0, num_users, dtype=jnp.int32)
    movie = jax.random.randint(k_mi, (batch,), 0, num_movies, dtype=jnp.int32)

    out = matrix_factorization_forward(user_emb, movie_emb, user, movie)
    out = jax.block_until_ready(out)

    # Reference check in plain JAX (same semantics as the PyTorch module).
    ref = jnp.sum(user_emb[user] * movie_emb[movie], axis=1)
    assert out.shape == (batch,)
    assert jnp.allclose(out, ref, atol=1e-4, rtol=1e-4), (out, ref)

    print("KERNEL_OK")
</pallas_src>

<mosaic_0001>
module attributes {stable_mosaic.version = 11 : i64} {
  func.func @_mf_kernel(%arg0: i32, %arg1: memref<1x128xi32, #tpu.memory_space<vmem>>, %arg2: memref<1x128xi32, #tpu.memory_space<vmem>>, %arg3: memref<32x64xf32, #tpu.memory_space<vmem>>, %arg4: memref<32x128xf32, #tpu.memory_space<vmem>>, %arg5: memref<1x128xf32, #tpu.memory_space<vmem>>) attributes {dimension_semantics = [#tpu.dimension_semantics<parallel>], iteration_bounds = array<i64: 1>, scalar_prefetch = 0 : i64, scratch_operands = 0 : i64, tpu.core_type = #tpu.core_type<tc>, window_params = [{transform_indices = @transform_0, window_bounds = array<i64: 1, 128>}, {transform_indices = @transform_1, window_bounds = array<i64: 1, 128>}, {pipeline_mode = #tpu.pipeline_mode<synchronous>, transform_indices = @transform_2, window_bounds = array<i64: 32, 64>}, {pipeline_mode = #tpu.pipeline_mode<synchronous>, transform_indices = @transform_3, window_bounds = array<i64: 32, 128>}, {transform_indices = @transform_4, window_bounds = array<i64: 1, 128>}]} {
    %c0 = arith.constant 0 : index
    %c0_0 = arith.constant 0 : index
    %0 = vector.load %arg1[%c0, %c0_0] : memref<1x128xi32, #tpu.memory_space<vmem>>, vector<1x128xi32>
    %1 = vector.shape_cast %0 : vector<1x128xi32> to vector<128xi32>
    %c0_1 = arith.constant 0 : index
    %c0_2 = arith.constant 0 : index
    %2 = vector.load %arg2[%c0_1, %c0_2] : memref<1x128xi32, #tpu.memory_space<vmem>>, vector<1x128xi32>
    %3 = vector.shape_cast %2 : vector<1x128xi32> to vector<128xi32>
    %4 = tpu.iota {dimensions = array<i32: 0>} : vector<64x128xi32>
    %5 = tpu.iota {dimensions = array<i32: 0>} : vector<128x128xi32>
    %6 = vector.shape_cast %1 : vector<128xi32> to vector<1x128xi32>
    %7 = vector.broadcast %6 : vector<1x128xi32> to vector<64x128xi32>
    %8 = arith.cmpi eq, %4, %7 : vector<64x128xi32>
    %9 = arith.extui %8 : vector<64x128xi1> to vector<64x128xi32>
    %10 = arith.sitofp %9 : vector<64x128xi32> to vector<64x128xf32>
    %11 = vector.shape_cast %3 : vector<128xi32> to vector<1x128xi32>
    %12 = vector.broadcast %11 : vector<1x128xi32> to vector<128x128xi32>
    %13 = arith.cmpi eq, %5, %12 : vector<128x128xi32>
    %14 = arith.extui %13 : vector<128x128xi1> to vector<128x128xi32>
    %15 = arith.sitofp %14 : vector<128x128xi32> to vector<128x128xf32>
    %c0_3 = arith.constant 0 : index
    %c0_4 = arith.constant 0 : index
    %16 = vector.load %arg3[%c0_3, %c0_4] : memref<32x64xf32, #tpu.memory_space<vmem>>, vector<32x64xf32>
    %cst = arith.constant dense<0.000000e+00> : vector<32x128xf32>
    %17 = tpu.matmul %16, %10, %cst {dimension_numbers = #tpu.dot_dimension_numbers<[1], [0], [0], [1], [0, 0, 1, 1], [], []>, precision = #tpu.contract_precision<fp32>} : vector<32x64xf32>, vector<64x128xf32>, vector<32x128xf32> -> vector<32x128xf32>
    %c0_5 = arith.constant 0 : index
    %c0_6 = arith.constant 0 : index
    %18 = vector.load %arg4[%c0_5, %c0_6] : memref<32x128xf32, #tpu.memory_space<vmem>>, vector<32x128xf32>
    %cst_7 = arith.constant dense<0.000000e+00> : vector<32x128xf32>
    %19 = tpu.matmul %18, %15, %cst_7 {dimension_numbers = #tpu.dot_dimension_numbers<[1], [0], [0], [1], [0, 0, 1, 1], [], []>, precision = #tpu.contract_precision<fp32>} : vector<32x128xf32>, vector<128x128xf32>, vector<32x128xf32> -> vector<32x128xf32>
    %20 = arith.mulf %17, %19 : vector<32x128xf32>
    %cst_8 = arith.constant dense<0.000000e+00> : vector<128xf32>
    %21 = vector.multi_reduction <add>, %20, %cst_8 [0] : vector<32x128xf32> to vector<128xf32>
    %c0_9 = arith.constant 0 : index
    %c0_10 = arith.constant 0 : index
    %22 = vector.load %arg5[%c0_9, %c0_10] : memref<1x128xf32, #tpu.memory_space<vmem>>, vector<1x128xf32>
    %23 = vector.shape_cast %22 : vector<1x128xf32> to vector<128xf32>
    %24 = vector.shape_cast %21 : vector<128xf32> to vector<1x128xf32>
    tpu.vector_store %arg5[%c0_9, %c0_10], %24 {strides = array<i32>} : memref<1x128xf32, #tpu.memory_space<vmem>>, vector<1x128xf32>,
    return
  }
  func.func @transform_0(%arg0: i32) -> (i32, i32) {
    %c0_i32 = arith.constant 0 : i32
    %c0_i32_0 = arith.constant 0 : i32
    return %arg0, %c0_i32 : i32, i32
  }
  func.func @transform_1(%arg0: i32) -> (i32, i32) {
    %c0_i32 = arith.constant 0 : i32
    %c0_i32_0 = arith.constant 0 : i32
    return %arg0, %c0_i32 : i32, i32
  }
  func.func @transform_2(%arg0: i32) -> (i32, i32) {
    %c0_i32 = arith.constant 0 : i32
    %c0_i32_0 = arith.constant 0 : i32
    %c0_i32_1 = arith.constant 0 : i32
    return %c0_i32, %c0_i32_0 : i32, i32
  }
  func.func @transform_3(%arg0: i32) -> (i32, i32) {
    %c0_i32 = arith.constant 0 : i32
    %c0_i32_0 = arith.constant 0 : i32
    %c0_i32_1 = arith.constant 0 : i32
    return %c0_i32, %c0_i32_0 : i32, i32
  }
  func.func @transform_4(%arg0: i32) -> (i32, i32) {
    %c0_i32 = arith.constant 0 : i32
    %c0_i32_0 = arith.constant 0 : i32
    return %arg0, %c0_i32 : i32, i32
  }
}

</mosaic_0001>

<bundles_post_ra>
// kernel: tpu_custom_call.1
= control target key start
LH: loop header
LB: loop body
LE: loop exit
PB: predicated region body
PF: predicated region fallthrough
CT: control target
= control target key end

     0   :  { %9 = vsyncpa [#allocation3], 0  ;;  %s2079_s0 = inlined_call_operand.hbm [shape: s32[1,128], index: 0, kind: input, shape index: {}]   ;;  %s2080_s1 = inlined_call_operand.hbm [shape: s32[1,128], index: 1, kind: input, shape index: {}]   ;;  %s2081_s2 = inlined_call_operand.hbm [shape: f32[32,64], index: 2, kind: input, shape index: {}]   ;;  %s2082_s3 = inlined_call_operand.hbm [shape: f32[32,128], index: 3, kind: input, shape index: {}]   ;;  %s2083_s4 = inlined_call_operand.hbm [shape: f32[1,128], index: 4, kind: output, shape index: {}]  }
   0x1   :  { %10 = vsyncpa [#allocation6], 0 }
   0x2   :  { %11 = vsyncpa [#allocation9], 0  ;;  %s29_s17 = sshll.u32 %s2080_s1, 4  ;;  %s30_s17 = int_to_ptr.hbm [resolvable:$true] %s29_s17 }
   0x3   :  { %12 = vsyncpa [#allocation4], 0  ;;  %s1223_s18 = smov [#allocation5]   ;;  %s18_s22 = sshll.u32 %s2079_s0, 4  ;;  %s19_s22 = int_to_ptr.hbm [resolvable:$true] %s18_s22 }
   0x4   :  { %s31_s19 = sshll.u32 %s1223_s18, 4  ;;  %s1224_s23 = smov [#allocation2]   ;;  %s32_s19 = int_to_ptr.vmem [resolvable:$true] %s31_s19 }
   0x5   :  { %34 = dma.hbm_to_vmem [thread:$0]  %s30_s17, 16, %s32_s19, [#allocation6]  }
   0x6   :  { %s20_s24 = sshll.u32 %s1224_s23, 4  ;;  %s39_s27 = sshll.u32 %s2081_s2, 4  ;;  %s21_s24 = int_to_ptr.vmem [resolvable:$true] %s20_s24  ;;  %s40_s27 = int_to_ptr.hbm [resolvable:$true] %s39_s27 }
   0x7   :  { %23 = dma.hbm_to_vmem [thread:$0]  %s19_s22, 16, %s21_s24, [#allocation3]  }
   0x8   :  { %s1225_s1 = smov [#allocation7]   ;;  %s52_s5 = sshll.u32 %s2082_s3, 4  ;;  %s53_s5 = int_to_ptr.hbm [resolvable:$true] %s52_s5 }
   0x9   :  { %s41_s28 = sshll.u32 %s1225_s1, 4  ;;  %s1226_s6 = smov 128   ;;  %s42_s28 = int_to_ptr.vmem [resolvable:$true] %s41_s28 }
   0xa   :  { %s1227_s0 = smov 8   ;;  %s1228_s7 = smov [#allocation8]  }
   0xb   :  { %47 = dma.hbm_to_vmem [thread:$0]  %s40_s27, 512, %s42_s28, [#allocation6], %s1226_s6, %s1226_s6, %s1227_s0  }
   0xc   :  { %s54_s8 = sshll.u32 %s1228_s7, 4  ;;  %s55_s8 = int_to_ptr.vmem [resolvable:$true] %s54_s8 }
   0xd   :  { %60 = dma.hbm_to_vmem [thread:$0]  %s53_s5, 512, %s55_s8, [#allocation9], %s1226_s6, %s1226_s6, %s1227_s0  }
   0xe   :  { %1215 = dma.done.wait [#allocation3], 16  }
   0xf   :  { %1216 = vsyncadd [#allocation3], 4294967280 }
  0x10   :  { %1217 = dma.done.wait [#allocation6], 528  }
  0x11   :  { %1218 = vsyncadd [#allocation6], 4294966768 }
  0x12   :  { %1219 = dma.done.wait [#allocation9], 512  }
  0x13   :  { %1220 = vsyncadd [#allocation9], 4294966784  ;;  %v79_v0 = vlaneseq  ;;  %vm174_vm0 = vcmask 523264   ;;  %v1298_v11 = vld [vmem:[#allocation2] ss:$0 sm:$0xff]  ;;  %v170_v12 = vld [vmem:[#allocation7] sm:$0xff] }
  0x14   :  { %v176_v14 = vsel %vm174_vm0, %v170_v12, 0  ;;  %v1229_v18 = vmov 1.0   ;;  %v1230_v19 = vmov 0.0   ;;  %v1408_v40 = vld [vmem:[#allocation5] ss:$0 sm:$0xff]  ;;  %v171_v53 = vld [vmem:[#allocation7 + $0x8] sm:$0xff] }
  0x15   :  { %v1269_v1 = vshrl.u32 %v79_v0, 7  ;;  %v1387_v33 = vand.u32 4294901760, %v176_v14  ;;  %v179_v63 = vsel %vm174_vm0, %v171_v53, 0  ;;  %s1231_s2 = smov [#allocation10]   ;;  %s976_s11 = sshll.u32 %s2083_s4, 4  ;;  %s977_s11 = int_to_ptr.hbm [resolvable:$true] %s976_s11 }
  0x16   :  { %s974_s3 = sshll.u32 %s1231_s2, 4  ;;  %s975_s3 = int_to_ptr.vmem [resolvable:$true] %s974_s3 }
  0x17   :  { %v1272_v2 = vadd.s32 56, %v1269_v1  ;;  %v1275_v3 = vadd.s32 48, %v1269_v1  ;;  %v1278_v4 = vadd.s32 40, %v1269_v1  ;;  %v1281_v5 = vadd.s32 32, %v1269_v1 }
  0x18   :  { %v1284_v6 = vadd.s32 24, %v1269_v1  ;;  %v1287_v7 = vadd.s32 16, %v1269_v1  ;;  %v1290_v8 = vadd.s32 8, %v1269_v1  ;;  %v1293_v9 = vadd.s32 120, %v1269_v1 }
  0x19   :  { %v1296_v10 = vadd.s32 112, %v1269_v1  ;;  %v1301_v13 = vadd.s32 104, %v1269_v1  ;;  %v1305_v15 = vadd.s32 96, %v1269_v1  ;;  %v1308_v16 = vadd.s32 88, %v1269_v1 }
  0x1a   :  { %v1311_v17 = vadd.s32 80, %v1269_v1  ;;  %vm104_vm1 = vcmp.eq.s32.totalorder %v1272_v2, %v1298_v11  ;;  %vm103_vm2 = vcmp.eq.s32.totalorder %v1275_v3, %v1298_v11  ;;  %vm102_vm3 = vcmp.eq.s32.totalorder %v1278_v4, %v1298_v11 }
  0x1b   :  { %vm101_vm4 = vcmp.eq.s32.totalorder %v1281_v5, %v1298_v11  ;;  %1012 = vmatpush.msk.msra.mxu0 %vm104_vm1, %v1229_v18  ;;  %v995_v20 = vsel %vm104_vm1, 1.0, %v1230_v19  ;;  %1020 = vmatpush.msk.msra.mxu3 %vm104_vm1, %v1229_v18  ;;  %v994_v21 = vsel %vm103_vm2, 1.0, %v1230_v19  ;;  %vm100_vm5 = vcmp.eq.s32.totalorder %v1284_v6, %v1298_v11 }
  0x1c   :  { %v993_v22 = vsel %vm102_vm3, 1.0, %v1230_v19  ;;  %v1343_v23 = vsub.f32 %v995_v20, %v995_v20  ;;  %v1345_v24 = vsub.f32 %v994_v21, %v994_v21  ;;  %vm99_vm6 = vcmp.eq.s32.totalorder %v1287_v7, %v1298_v11  ;;  %v172_v21 = vld [vmem:[#allocation7 + $0x10] sm:$0xff] }
  0x1d   :  { %v1347_v25 = vsub.f32 %v993_v22, %v993_v22  ;;  %1013 = vmatpush.msk.msra.mxu0 %vm103_vm2, %v1229_v18  ;;  %1021 = vmatpush.msk.msra.mxu3 %vm103_vm2, %v1229_v18  ;;  %v992_v26 = vsel %vm101_vm4, 1.0, %v1230_v19  ;;  %vm98_vm7 = vcmp.eq.s32.totalorder %v1290_v8, %v1298_v11  ;;  %v991_v27 = vsel %vm100_vm5, 1.0, %v1230_v19 }
  0x1e   :  { %vm97_vm8 = vcmp.eq.s32.totalorder %v1269_v1, %v1298_v11  ;;  %327 = vmatpush.msra.mxu2 %v1343_v23  ;;  %v254_v28 = vand.u32 4294901760, %v1343_v23  ;;  %v260_v29 = vand.u32 4294901760, %v1345_v24  ;;  %v1374_v30 = vsub.f32 %v992_v26, %v992_v26 }
  0x1f   :  { %v266_v31 = vand.u32 4294901760, %v1347_v25  ;;  %1014 = vmatpush.msk.msra.mxu0 %vm102_vm3, %v1229_v18  ;;  %1022 = vmatpush.msk.msra.mxu3 %vm102_vm3, %v1229_v18  ;;  %v1385_v32 = vsub.f32 %v991_v27, %v991_v27  ;;  %v990_v34 = vsel %vm99_vm6, 1.0, %v1230_v19  ;;  %v989_v35 = vsel %vm98_vm7, 1.0, %v1230_v19 }
  0x20   :  { %330 = vmatpush.msra.mxu2 %v1345_v24  ;;  %v255_v36 = vsub.f32 %v1343_v23, %v254_v28  ;;  %v261_v37 = vsub.f32 %v1345_v24, %v260_v29  ;;  %v272_v39 = vand.u32 4294901760, %v1374_v30  ;;  %v1419_v41 = vsub.f32 %v176_v14, %v1387_v33 }
  0x21   :  { %v267_v38 = vsub.f32 %v1347_v25, %v266_v31  ;;  %1015 = vmatpush.msk.msra.mxu0 %vm101_vm4, %v1229_v18  ;;  %1023 = vmatpush.msk.msra.mxu3 %vm101_vm4, %v1229_v18  ;;  %v1421_v42 = vsub.f32 %v990_v34, %v990_v34  ;;  %v278_v43 = vand.u32 4294901760, %v1385_v32  ;;  %v1424_v44 = vsub.f32 %v989_v35, %v989_v35 }
  0x22   :  { %v256_v45 = vand.u32 4294901760, %v255_v36  ;;  %333 = vmatpush.msra.mxu2 %v1347_v25  ;;  %v262_v46 = vand.u32 4294901760, %v261_v37  ;;  %v273_v48 = vsub.f32 %v1374_v30, %v272_v39  ;;  %v213_v49 = vand.u32 4294901760, %v1419_v41 }
  0x23   :  { %v268_v47 = vand.u32 4294901760, %v267_v38  ;;  %1016 = vmatpush.msk.msra.mxu0 %vm100_vm5, %v1229_v18  ;;  %1024 = vmatpush.msk.msra.mxu3 %vm100_vm5, %v1229_v18  ;;  %v279_v50 = vsub.f32 %v1385_v32, %v278_v43  ;;  %v284_v51 = vand.u32 4294901760, %v1421_v42  ;;  %v988_v52 = vsel %vm97_vm8, 1.0, %v1230_v19 }
  0x24   :  { %257 = vmatpush.msra.mxu1 %v256_v45  ;;  %336 = vmatpush.msra.mxu2 %v1374_v30  ;;  %v274_v54 = vand.u32 4294901760, %v273_v48  ;;  %v1448_v55 = vsub.f32 %v988_v52, %v988_v52  ;;  %vm2084_vm9 = vcmp.eq.s32.totalorder %v1293_v9, %v1408_v40  ;;  %v290_v56 = vand.u32 4294901760, %v1424_v44 }
  0x25   :  { %1017 = vmatpush.msk.msra.mxu0 %vm99_vm6, %v1229_v18  ;;  %v214_v57 = vsub.f32 %v1419_v41, %v213_v49  ;;  %1025 = vmatpush.msk.msra.mxu3 %vm99_vm6, %v1229_v18  ;;  %v280_v58 = vand.u32 4294901760, %v279_v50  ;;  %v285_v59 = vsub.f32 %v1421_v42, %v284_v51  ;;  %v1011_v60 = vsel %vm2084_vm9, 1.0, %v1230_v19 }
  0x26   :  { %263 = vmatpush.msra.mxu1 %v262_v46  ;;  %339 = vmatpush.msra.mxu2 %v1385_v32  ;;  %v291_v61 = vsub.f32 %v1424_v44, %v290_v56  ;;  %v1473_v62 = vsub.f32 %v1011_v60, %v1011_v60  ;;  %vm2085_vm10 = vcmp.eq.s32.totalorder %v1296_v10, %v1408_v40  ;;  %v1486_v14 = vand.u32 4294901760, %v179_v63 }
  0x27   :  { %1018 = vmatpush.msk.msra.mxu0 %vm98_vm7, %v1229_v18  ;;  %v215_v0 = vand.u32 4294901760, %v214_v57  ;;  %1026 = vmatpush.msk.msra.mxu3 %vm98_vm7, %v1229_v18  ;;  %v286_v12 = vand.u32 4294901760, %v285_v59  ;;  %v296_v20 = vand.u32 4294901760, %v1448_v55  ;;  %v1010_v27 = vsel %vm2085_vm10, 1.0, %v1230_v19 }
  0x28   :  { %269 = vmatpush.msra.mxu1 %v268_v47  ;;  %342 = vmatpush.msra.mxu2 %v1421_v42  ;;  %v292_v22 = vand.u32 4294901760, %v291_v61  ;;  %v588_v26 = vand.u32 4294901760, %v1473_v62  ;;  %vm135_vm11 = vcmp.eq.s32.totalorder %v1301_v13, %v1408_v40  ;;  %v1506_v34 = vsub.f32 %v179_v63, %v1486_v14 }
  0x29   :  { %1019 = vmatpush.msk.msra.mxu0 %vm97_vm8, %v1229_v18  ;;  %1027 = vmatpush.msk.msra.mxu3 %vm97_vm8, %v1229_v18  ;;  %v297_v35 = vsub.f32 %v1448_v55, %v296_v20  ;;  %v1511_v36 = vsub.f32 %v1010_v27, %v1010_v27  ;;  %v1009_v37 = vsel %vm135_vm11, 1.0, %v1230_v19  ;;  %vm134_vm12 = vcmp.eq.s32.totalorder %v1305_v15, %v1408_v40 }
  0x2a   :  { %216 = vmatmul.f32.vlgmr.msra.gmra.mxu0 %v215_v0  ;;  %275 = vmatpush.msra.mxu1 %v274_v54  ;;  %v589_v38 = vsub.f32 %v1473_v62, %v588_v26  ;;  %v1520_v45 = vsub.f32 %v1009_v37, %v1009_v37  ;;  %v182_v46 = vsel %vm174_vm0, %v172_v21, 0  ;;  %v221_v47 = vand.u32 4294901760, %v1506_v34 }
  0x2b   :  { %345 = vmatpush.msra.mxu2 %v1424_v44  ;;  %397 = vmatmul.f32.vlgmr.msra.gmra.mxu3 %v213_v49  ;;  %v298_v48 = vand.u32 4294901760, %v297_v35  ;;  %v594_v50 = vand.u32 4294901760, %v1511_v36  ;;  %v1008_v52 = vsel %vm134_vm12, 1.0, %v1230_v19  ;;  %vm133_vm13 = vcmp.eq.s32.totalorder %v1308_v16, %v1408_v40 }
  0x2c   :  { %281 = vmatpush.msra.mxu1 %v280_v58  ;;  %v590_v53 = vand.u32 4294901760, %v589_v38  ;;  %430 = vmatpush.msrb.mxu0 %v254_v28  ;;  %v2097_v54 = vand.u32 4294901760, %v1520_v45  ;;  %v1535_v57 = vsub.f32 %v1008_v52, %v1008_v52  ;;  %v222_v49 = vsub.f32 %v1506_v34, %v221_v47 }
  0x2d   :  { %348 = vmatpush.msra.mxu2 %v1448_v55  ;;  %v595_v59 = vsub.f32 %v1511_v36, %v594_v50  ;;  %v1007_v23 = vsel %vm133_vm13, 1.0, %v1230_v19  ;;  %vm132_vm14 = vcmp.eq.s32.totalorder %v1311_v17, %v1408_v40  ;;  %v1557_v61 = vand.u32 4294901760, %v182_v46  ;;  %v519_v55 = vld [vmem:[#allocation8 + $0x10] sm:$0xff] }
  0x2e   :  { %287 = vmatpush.msra.mxu1 %v286_v12  ;;  %351 = vmatmul.f32.vlgmr.msra.gmra.mxu2 %v1419_v41  ;;  %v601_v28 = vsub.f32 %v1520_v45, %v2097_v54  ;;  %v2096_v58 = vand.u32 4294901760, %v1535_v57  ;;  %v1555_v60 = vsub.f32 %v1007_v23, %v1007_v23  ;;  %v223_v63 = vand.u32 4294901760, %v222_v49 }
  0x2f   :  { %1036 = vmatpush.msk.msrb.mxu2 %vm2084_vm9, %v1229_v18  ;;  %591 = vmatpush.msrb.mxu3 %v590_v53  ;;  %v596_v0 = vand.u32 4294901760, %v595_v59  ;;  %v1006_v41 = vsel %vm132_vm14, 1.0, %v1230_v19  ;;  %v1568_v12 = vadd.s32 72, %v1269_v1  ;;  %v1577_v37 = vsub.f32 %v182_v46, %v1557_v61  ;;  %v173_v59 = vld [vmem:[#allocation7 + $0x18] sm:$0xff] }
  0x30   :  { %293 = vmatpush.msra.mxu1 %v292_v22  ;;  %v602_v21 = vand.u32 4294901760, %v601_v28  ;;  %434 = vmatpush.msrb.mxu0 %v260_v29  ;;  %v607_v27 = vsub.f32 %v1535_v57, %v2096_v58  ;;  %v2092_v35 = vand.u32 4294901760, %v1555_v60  ;;  %v1583_v22 = vsub.f32 %v1006_v41, %v1006_v41 }
  0x31   :  { %1037 = vmatpush.msk.msrb.mxu2 %vm2085_vm10, %v1229_v18  ;;  %597 = vmatpush.msrb.mxu3 %v596_v0  ;;  %vm2090_vm15 = vcmp.eq.s32.totalorder %v1568_v12, %v1408_v40  ;;  %v1588_v24 = vadd.s32 64, %v1269_v1  ;;  %vm129_vm9 = vcmp.eq.s32.totalorder %v1272_v2, %v1408_v40  ;;  %v229_v46 = vand.u32 4294901760, %v1577_v37 }
  0x32   :  { %224 = vmatmul.f32.gmra.mxu0 %v223_v63  ;;  %299 = vmatpush.msra.mxu1 %v298_v48  ;;  %v608_v29 = vand.u32 4294901760, %v607_v27  ;;  %v613_v38 = vsub.f32 %v1555_v60, %v2092_v35  ;;  %v1005_v52 = vsel %vm2090_vm15, 1.0, %v1230_v19  ;;  %v2086_v48 = vand.u32 4294901760, %v1583_v22 }
  0x33   :  { %301 = vmatmul.f32.vlgmr.msra.gmra.mxu1 %v1387_v33  ;;  %1038 = vmatpush.msk.msrb.mxu2 %vm135_vm11, %v1229_v18  ;;  %v1606_v53 = vsub.f32 %v1005_v52, %v1005_v52  ;;  %vm2093_vm10 = vcmp.eq.s32.totalorder %v1588_v24, %v1408_v40  ;;  %v1003_v49 = vsel %vm129_vm9, 1.0, %v1230_v19  ;;  %v230_v28 = vsub.f32 %v1577_v37, %v229_v46 }
  0x34   :  { %1028 = vmatpush.msk.msrb.mxu1 %vm104_vm1, %v1229_v18  ;;  %603 = vmatpush.msrb.mxu3 %v602_v21  ;;  %v614_v23 = vand.u32 4294901760, %v613_v38  ;;  %v1004_v63 = vsel %vm2093_vm10, 1.0, %v1230_v19  ;;  %v1625_v0 = vsub.f32 %v1003_v49, %v1003_v49  ;;  %v619_v41 = vsub.f32 %v1583_v22, %v2086_v48 }
  0x35   :  { %1039 = vmatpush.msk.msrb.mxu2 %vm134_vm12, %v1229_v18  ;;  %403 = vmatmul.f32.gmra.mxu3 %v221_v47  ;;  %v2088_v21 = vand.u32 4294901760, %v1606_v53  ;;  %v1635_v27 = vsub.f32 %v1004_v63, %v1004_v63  ;;  %vm128_vm1 = vcmp.eq.s32.totalorder %v1275_v3, %v1408_v40  ;;  %v231_v38 = vand.u32 4294901760, %v230_v28 }
  0x36   :  { %609 = vmatpush.msrb.mxu3 %v608_v29  ;;  %356 = vmatmul.f32.gmra.mxu2 %v1506_v34  ;;  %v2087_v52 = vand.u32 4294901760, %v1625_v0  ;;  %v185_v49 = vsel %vm174_vm0, %v173_v59, 0  ;;  %v1002_v47 = vsel %vm128_vm1, 1.0, %v1230_v19  ;;  %v620_v34 = vand.u32 4294901760, %v619_v41 }
  0x37   :  { %1029 = vmatpush.msk.msrb.mxu1 %vm103_vm2, %v1229_v18  ;;  %1040 = vmatpush.msk.msrb.mxu2 %vm133_vm13, %v1229_v18  ;;  %v625_v29 = vsub.f32 %v1606_v53, %v2088_v21  ;;  %v2089_v59 = vand.u32 4294901760, %v1635_v27  ;;  %v1658_v28 = vand.u32 4294901760, %v185_v49  ;;  %v1665_v48 = vsub.f32 %v1002_v47, %v1002_v47 }
  0x38   :  { %615 = vmatpush.msrb.mxu3 %v614_v23  ;;  %438 = vmatpush.msrb.mxu0 %v266_v31  ;;  %v637_v63 = vsub.f32 %v1625_v0, %v2087_v52  ;;  %vm127_vm0 = vcmp.eq.s32.totalorder %v1278_v4, %v1408_v40  ;;  %vm126_vm2 = vcmp.eq.s32.totalorder %v1281_v5, %v1408_v40  ;;  %v2105_v13 = vand.u32 4294901760, %v1583_v22 }
  0x39   :  { %1041 = vmatpush.msk.msrb.mxu2 %vm132_vm14, %v1229_v18  ;;  %1030 = vmatpush.msk.msrb.mxu1 %vm102_vm3, %v1229_v18  ;;  %v626_v25 = vand.u32 4294901760, %v625_v29  ;;  %v631_v31 = vsub.f32 %v1635_v27, %v2089_v59  ;;  %v1681_v23 = vsub.f32 %v185_v49, %v1658_v28  ;;  %v1001_v41 = vsel %vm127_vm0, 1.0, %v1230_v19  ;;  %v517_v29 = vld [vmem:[#allocation8] sm:$0xff] }
  0x3a   :  { %232 = vmatmul.f32.gmra.mxu0 %v231_v38  ;;  %621 = vmatpush.msrb.mxu3 %v620_v34  ;;  %v638_v47 = vand.u32 4294901760, %v637_v63  ;;  %v2091_v52 = vand.u32 4294901760, %v1665_v48  ;;  %v1688_v21 = vsub.f32 %v1001_v41, %v1001_v41  ;;  %v1000_v34 = vsel %vm126_vm2, 1.0, %v1230_v19 }
  0x3b   :  { %305 = vmatmul.f32.gmra.mxu1 %v1486_v14  ;;  %1042 = vmatpush.msk.msrb.mxu2 %vm2090_vm15, %v1229_v18  ;;  %v632_v49 = vand.u32 4294901760, %v631_v31  ;;  %v237_v38 = vand.u32 4294901760, %v1681_v23  ;;  %vm125_vm3 = vcmp.eq.s32.totalorder %v1284_v6, %v1408_v40  ;;  %v1710_v41 = vsub.f32 %v1000_v34, %v1000_v34 }
  0x3c   :  { %627 = vmatpush.msrb.mxu3 %v626_v25  ;;  %442 = vmatpush.msrb.mxu0 %v272_v39  ;;  %v643_v63 = vsub.f32 %v1665_v48, %v2091_v52  ;;  %v2094_v31 = vand.u32 4294901760, %v1688_v21  ;;  %v999_v59 = vsel %vm125_vm3, 1.0, %v1230_v19  ;;  %vm124_vm15 = vcmp.eq.s32.totalorder %v1287_v7, %v1408_v40 }
  0x3d   :  { %1043 = vmatpush.msk.msrb.mxu2 %vm2093_vm10, %v1229_v18  ;;  %409 = vmatmul.f32.gmra.mxu3 %v229_v46  ;;  %v238_v30 = vsub.f32 %v1681_v23, %v237_v38  ;;  %v1723_v39 = vsub.f32 %v999_v59, %v999_v59  ;;  %v1727_v25 = vand.u32 4294901760, %v517_v29  ;;  %v2095_v35 = vand.u32 4294901760, %v1710_v41 }
  0x3e   :  { %633 = vmatpush.msrb.mxu3 %v632_v49  ;;  %361 = vmatmul.f32.gmra.mxu2 %v1577_v37  ;;  %v644_v34 = vand.u32 4294901760, %v643_v63  ;;  %v649_v52 = vsub.f32 %v1688_v21, %v2094_v31  ;;  %v998_v46 = vsel %vm124_vm15, 1.0, %v1230_v19  ;;  %vm123_vm10 = vcmp.eq.s32.totalorder %v1290_v8, %v1408_v40 }
  0x3f   :  { %1031 = vmatpush.msk.msrb.mxu1 %vm101_vm4, %v1229_v18  ;;  %1044 = vmatpush.msk.msrb.mxu2 %vm129_vm9, %v1229_v18  ;;  %v239_v37 = vand.u32 4294901760, %v238_v30  ;;  %v660_v59 = vand.u32 4294901760, %v1723_v39  ;;  %v1747_v49 = vsub.f32 %v998_v46, %v998_v46  ;;  %v655_v31 = vsub.f32 %v1710_v41, %v2095_v35  ;;  %v518_v46 = vld [vmem:[#allocation8 + $0x8] sm:$0xff] }
  0x40   :  { %639 = vmatpush.msrb.mxu3 %v638_v47  ;;  %446 = vmatpush.msrb.mxu0 %v278_v43  ;;  %v650_v63 = vand.u32 4294901760, %v649_v52  ;;  %v997_v30 = vsel %vm123_vm10, 1.0, %v1230_v19  ;;  %vm122_vm4 = vcmp.eq.s32.totalorder %v1269_v1, %v1408_v40  ;;  %v1783_v54 = vsub.f32 %v517_v29, %v1727_v25 }
  0x41   :  { %1045 = vmatpush.msk.msrb.mxu2 %vm128_vm1, %v1229_v18  ;;  %1032 = vmatpush.msk.msrb.mxu1 %vm100_vm5, %v1229_v18  ;;  %v661_v32 = vsub.f32 %v1723_v39, %v660_v59  ;;  %v666_v43 = vand.u32 4294901760, %v1747_v49  ;;  %v1774_v52 = vsub.f32 %v997_v30, %v997_v30  ;;  %v996_v47 = vsel %vm122_vm4, 1.0, %v1230_v19 }
  0x42   :  { %240 = vmatmul.f32.gmra.mxu0 %v239_v37  ;;  %645 = vmatpush.msrb.mxu3 %v644_v34  ;;  %v656_v35 = vand.u32 4294901760, %v655_v31  ;;  %v1780_v58 = vsub.f32 %v996_v47, %v996_v47  ;;  %v555_v34 = vand.u32 4294901760, %v1783_v54  ;;  %v1798_v30 = vand.u32 4294901760, %v518_v46 }
  0x43   :  { %309 = vmatmul.f32.gmra.mxu1 %v1557_v61  ;;  %1046 = vmatpush.msk.msrb.mxu2 %vm127_vm0, %v1229_v18  ;;  %v667_v19 = vsub.f32 %v1747_v49, %v666_v43  ;;  %v672_v37 = vand.u32 4294901760, %v1774_v52  ;;  %v662_v31 = vand.u32 4294901760, %v661_v32  ;;  %v1854_v32 = vand.u32 4294901760, %v519_v55 }
  0x44   :  { %651 = vmatpush.msrb.mxu3 %v650_v63  ;;  %450 = vmatpush.msrb.mxu0 %v284_v51  ;;  %v678_v29 = vand.u32 4294901760, %v1780_v58  ;;  %v1825_v44 = vsub.f32 %v518_v46, %v1798_v30  ;;  %vm2098_vm5 = vcmp.eq.s32.totalorder %v1293_v9, %v1408_v40  ;;  %v520_v9 = vld [vmem:[#allocation8 + $0x18] sm:$0xff]  ;;  %v2107_v16 = vand.u32 4294901760, %v1635_v27 }
  0x45   :  { %1047 = vmatpush.msk.msrb.mxu2 %vm126_vm2, %v1229_v18  ;;  %415 = vmatmul.f32.gmra.mxu3 %v237_v38  ;;  %v673_v63 = vsub.f32 %v1774_v52, %v672_v37  ;;  %v668_v42 = vand.u32 4294901760, %v667_v19  ;;  %v556_v38 = vsub.f32 %v1783_v54, %v555_v34  ;;  %v1873_v47 = vsub.f32 %v519_v55, %v1854_v32 }
  0x46   :  { %657 = vmatpush.msrb.mxu3 %v656_v35  ;;  %366 = vmatmul.f32.gmra.mxu2 %v1681_v23  ;;  %v679_v51 = vsub.f32 %v1780_v58, %v678_v29  ;;  %v2110_v17 = vand.u32 4294901760, %v1625_v0 }
  0x47   :  { %454 = vmatpush.msrb.mxu0 %v290_v56  ;;  %1033 = vmatpush.msk.msrb.mxu1 %vm99_vm6, %v1229_v18  ;;  %v674_v56 = vand.u32 4294901760, %v673_v63  ;;  %v557_v23 = vand.u32 4294901760, %v556_v38  ;;  %vm2099_vm6 = vmmov %vm2098_vm5 }
  0x48   :  { %1048 = vmatpush.msk.msrb.mxu2 %vm125_vm3, %v1229_v18  ;;  %663 = vmatpush.msrb.mxu3 %v662_v31  ;;  %v680_v35 = vand.u32 4294901760, %v679_v51 }
  0x49   :  { %458 = vmatpush.msrb.mxu0 %v296_v20  ;;  %1034 = vmatpush.msk.msrb.mxu1 %vm98_vm7, %v1229_v18  ;;  %v563_v20 = vand.u32 4294901760, %v1825_v44  ;;  %vm2101_vm7 = vcmp.eq.s32.totalorder %v1296_v10, %v1408_v40  ;;  %v2104_v10 = vand.u32 4294901760, %v1555_v60 }
  0x4a   :  { %1049 = vmatpush.msk.msrb.mxu2 %vm124_vm15, %v1229_v18  ;;  %460 = vmatmul.f32.vlgmr.msrb.gmra.mxu0 %v1387_v33 }
  0x4b   :  { %669 = vmatpush.msrb.mxu3 %v668_v42  ;;  %313 = vmatmul.f32.gmra.mxu1 %v1658_v28  ;;  %v564_v11 = vsub.f32 %v1825_v44, %v563_v20 }
  0x4c   :  { %1050 = vmatpush.msk.msrb.mxu2 %vm123_vm10, %v1229_v18  ;;  %701 = vmatpush.msra.mxu0 %v1473_v62 }
  0x4d   :  { %675 = vmatpush.msrb.mxu3 %v674_v56  ;;  %1035 = vmatpush.msk.msrb.mxu1 %vm97_vm8, %v1229_v18  ;;  %v565_v62 = vand.u32 4294901760, %v564_v11  ;;  %vm2102_vm8 = vmmov %vm2101_vm7 }
  0x4e   :  { %1051 = vmatpush.msk.msrb.mxu2 %vm122_vm4, %v1229_v18  ;;  %704 = vmatpush.msra.mxu0 %v1511_v36  ;;  %v2103_v36 = vand.u32 4294901760, %v1535_v57 }
  0x4f   :  { %681 = vmatpush.msrb.mxu3 %v680_v35  ;;  %558 = vmatmul.f32.vlgmr.msrb.gmra.mxu2 %v557_v23 }
  0x50   :  { %683 = vmatmul.f32.vlgmr.msrb.gmra.mxu3 %v1727_v25  ;;  %707 = vmatpush.msra.mxu0 %v1520_v45 }
  0x51   :  { %828 = vmatpush.msra.mxu2 %v588_v26  ;;  %1068 = vmatpush.msk.msra.mxu3 %vm2098_vm5, %v1229_v18  ;;  %v2100_v26 = vand.u32 4294901760, %v1520_v45  ;;  %v1899_v45 = vand.u32 4294901760, %v520_v9 }
  0x52   :  { %710 = vmatpush.msra.mxu0 %v1535_v57  ;;  %1052 = vmatpush.msk.msra.mxu1 %vm2099_vm6, %v1229_v18 }
  0x53   :  { %832 = vmatpush.msra.mxu2 %v594_v50  ;;  %464 = vmatmul.f32.gmra.mxu0 %v1486_v14  ;;  %v1927_v57 = vsub.f32 %v520_v9, %v1899_v45 }
  0x54   :  { %501 = vmatmul.f32.vlgmr.msrb.gmra.mxu1 %v1387_v33  ;;  %713 = vmatpush.msra.mxu0 %v1555_v60  ;;  %v571_v33 = vand.u32 4294901760, %v1873_v47  ;;  %v2106_v60 = vand.u32 4294901760, %v1606_v53 }
  0x55   :  { %836 = vmatpush.msra.mxu2 %v2100_v26  ;;  %1069 = vmatpush.msk.msra.mxu3 %vm2101_vm7, %v1229_v18 }
  0x56   :  { %716 = vmatpush.msra.mxu0 %v1583_v22  ;;  %1053 = vmatpush.msk.msra.mxu1 %vm2102_vm8, %v1229_v18  ;;  %v572_v50 = vsub.f32 %v1873_v47, %v571_v33 }
  0x57   :  { %840 = vmatpush.msra.mxu2 %v2103_v36  ;;  %1070 = vmatpush.msk.msra.mxu3 %vm135_vm11, %v1229_v18 }
  0x58   :  { %566 = vmatmul.f32.gmra.mxu2 %v565_v62  ;;  %687 = vmatmul.f32.gmra.mxu3 %v1798_v30  ;;  %v573_v15 = vand.u32 4294901760, %v572_v50 }
  0x59   :  { %719 = vmatpush.msra.mxu0 %v1606_v53  ;;  %1054 = vmatpush.msk.msra.mxu1 %vm135_vm11, %v1229_v18  ;;  %vm2108_vm11 = vcmp.eq.s32.totalorder %v1568_v12, %v1408_v40  ;;  %v2113_v12 = vand.u32 4294901760, %v1665_v48 }
  0x5a   :  { %844 = vmatpush.msra.mxu2 %v2104_v10  ;;  %1071 = vmatpush.msk.msra.mxu3 %vm134_vm12, %v1229_v18 }
  0x5b   :  { %722 = vmatpush.msra.mxu0 %v1635_v27  ;;  %1055 = vmatpush.msk.msra.mxu1 %vm134_vm12, %v1229_v18  ;;  %vm2109_vm12 = vmmov %vm2108_vm11 }
  0x5c   :  { %848 = vmatpush.msra.mxu2 %v2105_v13  ;;  %1072 = vmatpush.msk.msra.mxu3 %vm133_vm13, %v1229_v18 }
  0x5d   :  { %468 = vmatmul.f32.gmra.mxu0 %v1557_v61  ;;  %505 = vmatmul.f32.gmra.mxu1 %v1486_v14  ;;  %v579_v14 = vand.u32 4294901760, %v1927_v57 }
  0x5e   :  { %725 = vmatpush.msra.mxu0 %v1625_v0  ;;  %1056 = vmatpush.msk.msra.mxu1 %vm133_vm13, %v1229_v18  ;;  %vm2111_vm13 = vcmp.eq.s32.totalorder %v1588_v24, %v1408_v40 }
  0x5f   :  { %852 = vmatpush.msra.mxu2 %v2106_v60  ;;  %1073 = vmatpush.msk.msra.mxu3 %vm132_vm14, %v1229_v18  ;;  %v580_v22 = vsub.f32 %v1927_v57, %v579_v14 }
  0x60   :  { %728 = vmatpush.msra.mxu0 %v1665_v48  ;;  %1057 = vmatpush.msk.msra.mxu1 %vm132_vm14, %v1229_v18  ;;  %vm2112_vm14 = vmmov %vm2111_vm13  ;;  %v2114_v48 = vand.u32 4294901760, %v1688_v21 }
  0x61   :  { %856 = vmatpush.msra.mxu2 %v2107_v16  ;;  %1074 = vmatpush.msk.msra.mxu3 %vm2108_vm11, %v1229_v18  ;;  %v581_v24 = vand.u32 4294901760, %v580_v22 }
  0x62   :  { %574 = vmatmul.f32.gmra.mxu2 %v573_v15  ;;  %691 = vmatmul.f32.gmra.mxu3 %v1854_v32 }
  0x63   :  { %731 = vmatpush.msra.mxu0 %v1688_v21  ;;  %1058 = vmatpush.msk.msra.mxu1 %vm2109_vm12, %v1229_v18 }
  0x64   :  { %860 = vmatpush.msra.mxu2 %v2110_v17  ;;  %1075 = vmatpush.msk.msra.mxu3 %vm2111_vm13, %v1229_v18 }
  0x65   :  { %734 = vmatpush.msra.mxu0 %v1710_v41  ;;  %1059 = vmatpush.msk.msra.mxu1 %vm2112_vm14, %v1229_v18 }
  0x66   :  { %864 = vmatpush.msra.mxu2 %v2113_v12  ;;  %1076 = vmatpush.msk.msra.mxu3 %vm129_vm9, %v1229_v18 }
  0x67   :  { %472 = vmatmul.f32.gmra.mxu0 %v1658_v28  ;;  %509 = vmatmul.f32.gmra.mxu1 %v1557_v61  ;;  %v2115_v61 = vand.u32 4294901760, %v1710_v41 }
  0x68   :  { %737 = vmatpush.msra.mxu0 %v1723_v39  ;;  %1060 = vmatpush.msk.msra.mxu1 %vm129_vm9, %v1229_v18 }
  0x69   :  { %868 = vmatpush.msra.mxu2 %v2114_v48  ;;  %1077 = vmatpush.msk.msra.mxu3 %vm128_vm1, %v1229_v18 }
  0x6a   :  { %740 = vmatpush.msra.mxu0 %v1747_v49  ;;  %1061 = vmatpush.msk.msra.mxu1 %vm128_vm1, %v1229_v18 }
  0x6b   :  { %872 = vmatpush.msra.mxu2 %v2115_v61  ;;  %1078 = vmatpush.msk.msra.mxu3 %vm127_vm0, %v1229_v18 }
  0x6c   :  { %582 = vmatmul.f32.gmra.mxu2 %v581_v24  ;;  %695 = vmatmul.f32.gmra.mxu3 %v1899_v45 }
  0x6d   :  { %743 = vmatpush.msra.mxu0 %v1774_v52  ;;  %1062 = vmatpush.msk.msra.mxu1 %vm127_vm0, %v1229_v18 }
  0x6e   :  { %876 = vmatpush.msra.mxu2 %v660_v59  ;;  %1079 = vmatpush.msk.msra.mxu3 %vm126_vm2, %v1229_v18 }
  0x6f   :  { %746 = vmatpush.msra.mxu0 %v1780_v58  ;;  %1063 = vmatpush.msk.msra.mxu1 %vm126_vm2, %v1229_v18 }
  0x70   :  { %880 = vmatpush.msra.mxu2 %v666_v43  ;;  %1080 = vmatpush.msk.msra.mxu3 %vm125_vm3, %v1229_v18 }
  0x71   :  { %749 = vmatmul.f32.vlgmr.msra.gmra.mxu0 %v1783_v54  ;;  %513 = vmatmul.f32.gmra.mxu1 %v1658_v28 }
  0x72   :  { %1064 = vmatpush.msk.msra.mxu1 %vm125_vm3, %v1229_v18  ;;  %884 = vmatpush.msra.mxu2 %v672_v37 }
  0x73   :  { %1081 = vmatpush.msk.msra.mxu3 %vm124_vm15, %v1229_v18 }
  0x74   :  { %1065 = vmatpush.msk.msra.mxu1 %vm124_vm15, %v1229_v18  ;;  %888 = vmatpush.msra.mxu2 %v678_v29 }
  0x75   :  { %1082 = vmatpush.msk.msra.mxu3 %vm123_vm10, %v1229_v18  ;;  %890 = vmatmul.f32.vlgmr.msra.gmra.mxu2 %v1727_v25 }
  0x76   :  { %1066 = vmatpush.msk.msra.mxu1 %vm123_vm10, %v1229_v18 }
  0x77   :  { %1083 = vmatpush.msk.msra.mxu3 %vm122_vm4, %v1229_v18 }
  0x78   :  { %1067 = vmatpush.msk.msra.mxu1 %vm122_vm4, %v1229_v18  ;;  %939 = vmatmul.f32.vlgmr.msra.gmra.mxu3 %v1727_v25 }
  0x79   :  { %754 = vmatmul.f32.gmra.mxu0 %v1825_v44  ;;  %803 = vmatmul.f32.vlgmr.msra.gmra.mxu1 %v555_v34 }
  0x7d   :  { %894 = vmatmul.f32.gmra.mxu2 %v1798_v30 }
  0x80   :  { %943 = vmatmul.f32.gmra.mxu3 %v1798_v30 }
  0x81   :  { %759 = vmatmul.f32.gmra.mxu0 %v1873_v47  ;;  %809 = vmatmul.f32.gmra.mxu1 %v563_v20 }
  0x85   :  { %898 = vmatmul.f32.gmra.mxu2 %v1854_v32 }
  0x88   :  { %947 = vmatmul.f32.gmra.mxu3 %v1854_v32 }
  0x89   :  { %764 = vmatmul.f32.gmra.mxu0 %v1927_v57  ;;  %815 = vmatmul.f32.gmra.mxu1 %v571_v33 }
  0x8d   :  { %902 = vmatmul.f32.gmra.mxu2 %v1899_v45 }
  0x90   :  { %951 = vmatmul.f32.gmra.mxu3 %v1899_v45 }
  0x91   :  { %821 = vmatmul.f32.gmra.mxu1 %v579_v14 }
  0xa7   :  { %v217_v1 = vpop.f32.mrf.mxu0 }
  0xae   :  { %v398_v2 = vpop.f32.mrf.mxu3 }
  0xaf   :  { %v225_v3 = vpop.f32.mrf.mxu0 }
  0xb0   :  { %v302_v4 = vpop.f32.mrf.mxu1 }
  0xb1   :  { %v303_v5 = vadd.f32 %v302_v4, %v217_v1  ;;  %v352_v6 = vpop.f32.mrf.mxu2 }
  0xb3   :  { %v353_v7 = vadd.f32 %v352_v6, %v303_v5 }
  0xb5   :  { %v399_v8 = vadd.f32 %v398_v2, %v353_v7 }
  0xb7   :  { %v233_v18 = vpop.f32.mrf.mxu0 }
  0xb8   :  { %v306_v40 = vpop.f32.mrf.mxu1  ;;  %v404_v54 = vpop.f32.mrf.mxu3 }
  0xb9   :  { %v307_v58 = vadd.f32 %v306_v40, %v225_v3  ;;  %v357_v53 = vpop.f32.mrf.mxu2 }
  0xbb   :  { %v358_v0 = vadd.f32 %v357_v53, %v307_v58 }
  0xbd   :  { %v405_v21 = vadd.f32 %v404_v54, %v358_v0 }
  0xbf   :  { %v241_v27 = vpop.f32.mrf.mxu0 }
  0xc0   :  { %v310_v28 = vpop.f32.mrf.mxu1  ;;  %v410_v25 = vpop.f32.mrf.mxu3 }
  0xc1   :  { %v311_v41 = vadd.f32 %v310_v28, %v233_v18  ;;  %v362_v39 = vpop.f32.mrf.mxu2 }
  0xc3   :  { %v363_v59 = vadd.f32 %v362_v39, %v311_v41 }
  0xc5   :  { %v411_v49 = vadd.f32 %v410_v25, %v363_v59 }
  0xc7   :  { %v461_v43 = vpop.f32.mrf.mxu0 }
  0xc8   :  { %v314_v52 = vpop.f32.mrf.mxu1  ;;  %v416_v19 = vpop.f32.mrf.mxu3  ;;  %v462_v16 = vadd.f32 %v461_v43, %v399_v8 }
  0xc9   :  { %v367_v46 = vpop.f32.mrf.mxu2  ;;  %v315_v7 = vadd.f32 %v314_v52, %v241_v27 }
  0xd0   :  { %v465_v37 = vpop.f32.mrf.mxu0 }
  0xd1   :  { %v502_v31 = vpop.f32.mrf.mxu1  ;;  %v466_v17 = vadd.f32 %v465_v37, %v405_v21  ;;  %v368_v21 = vadd.f32 %v367_v46, %v315_v7 }
  0xd2   :  { %v559_v29 = vpop.f32.mrf.mxu2  ;;  %v503_v48 = vadd.f32 %v502_v31, %v462_v16 }
  0xd3   :  { %v684_v34 = vpop.f32.mrf.mxu3  ;;  %v417_v37 = vadd.f32 %v416_v19, %v368_v21 }
  0xd4   :  { %v685_v11 = vadd.f32 %v684_v34, %v559_v29 }
  0xda   :  { %v469_v30 = vpop.f32.mrf.mxu0  ;;  %v506_v63 = vpop.f32.mrf.mxu1 }
  0xdb   :  { %v567_v42 = vpop.f32.mrf.mxu2  ;;  %v688_v51 = vpop.f32.mrf.mxu3  ;;  %v507_v61 = vadd.f32 %v506_v63, %v466_v17  ;;  %v470_v58 = vadd.f32 %v469_v30, %v411_v49 }
  0xdc   :  { %v689_v36 = vadd.f32 %v688_v51, %v567_v42 }
  0xe4   :  { %v473_v38 = vpop.f32.mrf.mxu0  ;;  %v510_v44 = vpop.f32.mrf.mxu1 }
  0xe5   :  { %v575_v56 = vpop.f32.mrf.mxu2  ;;  %v692_v35 = vpop.f32.mrf.mxu3  ;;  %v511_v28 = vadd.f32 %v510_v44, %v470_v58  ;;  %v474_v63 = vadd.f32 %v473_v38, %v417_v37 }
  0xe6   :  { %v693_v12 = vadd.f32 %v692_v35, %v575_v56 }
  0xee   :  { %v750_v23 = vpop.f32.mrf.mxu0  ;;  %v514_v55 = vpop.f32.mrf.mxu1 }
  0xef   :  { %v583_v20 = vpop.f32.mrf.mxu2  ;;  %v696_v32 = vpop.f32.mrf.mxu3  ;;  %v751_v26 = vadd.f32 %v750_v23, %v685_v11  ;;  %v515_v52 = vadd.f32 %v514_v55, %v474_v63 }
  0xf0   :  { %v697_v0 = vadd.f32 %v696_v32, %v583_v20 }
  0xf6   :  { %v755_v47 = vpop.f32.mrf.mxu0  ;;  %v804_v62 = vpop.f32.mrf.mxu1 }
  0xf7   :  { %v805_v33 = vadd.f32 %v804_v62, %v751_v26  ;;  %v756_v10 = vadd.f32 %v755_v47, %v689_v36 }
  0xf8   :  { %v891_v9 = vpop.f32.mrf.mxu2 }
  0xf9   :  { %v892_v50 = vadd.f32 %v891_v9, %v805_v33 }
  0xfb   :  { %v940_v45 = vpop.f32.mrf.mxu3 }
  0xfc   :  { %v941_v22 = vadd.f32 %v940_v45, %v892_v50 }
  0xfe   :  { %v810_v13 = vpop.f32.mrf.mxu1  ;;  %v760_v15 = vpop.f32.mrf.mxu0  ;;  %v955_v3 = vmul.f32 %v941_v22, %v503_v48 }
  0xff   :  { %v811_v57 = vadd.f32 %v810_v13, %v756_v10  ;;  %v761_v2 = vadd.f32 %v760_v15, %v693_v12 }
 0x100   :  { %v895_v60 = vpop.f32.mrf.mxu2 }
 0x101   :  { %v896_v14 = vadd.f32 %v895_v60, %v811_v57 }
 0x103   :  { %v944_v24 = vpop.f32.mrf.mxu3 }
 0x104   :  { %v945_v1 = vadd.f32 %v944_v24, %v896_v14 }
 0x106   :  { %v956_v4 = vmul.f32 %v945_v1, %v507_v61  ;;  %v816_v5 = vpop.f32.mrf.mxu1  ;;  %v765_v53 = vpop.f32.mrf.mxu0 }
 0x107   :  { %v817_v6 = vadd.f32 %v816_v5, %v761_v2  ;;  %v766_v39 = vadd.f32 %v765_v53, %v697_v0 }
 0x108   :  { %v959_v18 = vadd.f32 %v956_v4, %v955_v3  ;;  %v899_v40 = vpop.f32.mrf.mxu2 }
 0x109   :  { %v900_v54 = vadd.f32 %v899_v40, %v817_v6 }
 0x10b   :  { %v948_v8 = vpop.f32.mrf.mxu3 }
 0x10c   :  { %v949_v41 = vadd.f32 %v948_v8, %v900_v54 }
 0x10e   :  { %v957_v25 = vmul.f32 %v949_v41, %v511_v28  ;;  %v822_v59 = vpop.f32.mrf.mxu1 }
 0x10f   :  { %v823_v43 = vadd.f32 %v822_v59, %v766_v39 }
 0x110   :  { %v960_v31 = vadd.f32 %v959_v18, %v957_v25  ;;  %v903_v29 = vpop.f32.mrf.mxu2 }
 0x111   :  { %v904_v34 = vadd.f32 %v903_v29, %v823_v43 }
 0x113   :  { %v952_v27 = vpop.f32.mrf.mxu3 }
 0x114   :  { %v953_v42 = vadd.f32 %v952_v27, %v904_v34 }
 0x116   :  { %v958_v51 = vmul.f32 %v953_v42, %v515_v52 }
 0x118   :  { %v961_v49 = vadd.f32 %v960_v31, %v958_v51 }
 0x11a   :  { %v962_v30 = vrot.slane %v961_v49, 4 }
 0x11c   :  { %v963_v56 = vadd.f32 %v962_v30, %v961_v49 }
 0x11e   :  { %v964_v35 = vrot.slane %v963_v56, 2 }
 0x120   :  { %v965_v46 = vadd.f32 %v964_v35, %v963_v56 }
 0x122   :  { %v966_v19 = vrot.slane %v965_v46, 1 }
 0x124   :  { %v967_v44 = vadd.f32 %v966_v19, %v965_v46 }
 0x126   :  { %968 = vst [vmem:[#allocation10] sm:$0x1] %v967_v44 }
 0x127   :  { %979 = dma.vmem_to_hbm [thread:$0]  %s975_s3, 16, %s977_s11, [#allocation4]  }
 0x128   :  { %1221 = dma.done.wait [#allocation4], 16  }
 0x129   :  { %1222 = vsyncadd [#allocation4], 4294967280 }
 0x12a   :  { %984 = vsyncpa [#allocation3], 1 }
 0x12b   :  { %985 = vsyncpa [#allocation6], 1 }
 0x12c   :  { %986 = vsyncpa [#allocation9], 1 }
 0x12d   :  { %987 = vsyncpa [#allocation4], 1 }

</bundles_post_ra>
